<compile_context>
chip_gen: v6e
topology: v6e:2x2x1
jax: 0.10.0
libtpu: 0.0.40
codegen_flags: <defaults>
</compile_context>

<pallas_src>
import numpy as np
import jax
import jax.numpy as jnp
from jax.experimental import pallas as pl
from jax.experimental.pallas import tpu as pltpu

EMBEDDING_DIM = 50
WINDOW_SIZE = 1
EXAMPLE_SIZE = (2 * WINDOW_SIZE + 1) * EMBEDDING_DIM   # 150
HIDDEN = 256
NUM_CLASSES = 25
NUM_CLASSES_PADDED = 128   # layer-3 matmul width (MXU-friendly); only first 25 cols stored


def _round_up(x, m):
    return (x + m - 1) // m * m


def _vmem_limit_bytes(tb):
    """Rough VMEM footprint for one batch tile (+30% headroom), used as scoped limit."""
    lanes_x = _round_up(EXAMPLE_SIZE, 128)      # 256 (lane-padded x tile)
    lanes_o = _round_up(NUM_CLASSES, 128)       # 128 (lane-padded out tile)
    est = (
        2 * tb * lanes_x * 4                    # double-buffered f32 x tiles
        + 2 * tb * lanes_o * 4                  # double-buffered out tiles
        + tb * lanes_x * 2                      # in-kernel bf16 copy of x
        + 2 * tb * HIDDEN * (4 + 2)             # h1/h2 f32 + bf16 temps
        + tb * NUM_CLASSES_PADDED * 4           # layer-3 f32 temp
        + (EXAMPLE_SIZE * HIDDEN + HIDDEN * HIDDEN + HIDDEN * NUM_CLASSES_PADDED) * 2
        + (2 * HIDDEN + NUM_CLASSES_PADDED) * 4
    )
    return int(min(120 * 1024 * 1024, max(32 * 1024 * 1024, int(est * 1.3))))


def _mlp_kernel(x_ref, w1_ref, b1_ref, w2_ref, b2_ref, w3_ref, b3_ref, o_ref):
    # x arrives f32; cast to bf16 in-kernel (keeps the HBM stream a single f32 read).
    x = x_ref[...].astype(jnp.bfloat16)

    # Layer 1: Linear(150 -> 256) + ReLU.  bf16 MXU inputs, f32 accumulation.
    h1 = jnp.dot(x, w1_ref[...], preferred_element_type=jnp.float32)
    h1 = jnp.maximum(h1 + b1_ref[...], 0.0)

    # Layer 2: Linear(256 -> 256) + ReLU.
    h2 = jnp.dot(h1.astype(jnp.bfloat16), w2_ref[...],
                 preferred_element_type=jnp.float32)
    h2 = jnp.maximum(h2 + b2_ref[...], 0.0)

    # Layer 3: matmul at N=128 (keeps MXU cadence clean), store only the real 25 columns.
    out = jnp.dot(h2.astype(jnp.bfloat16), w3_ref[...],
                  preferred_element_type=jnp.float32)
    out = out + b3_ref[...]
    o_ref[...] = out[:, :NUM_CLASSES].astype(o_ref.dtype)


def prepare_params(w1, b1, w2, b2, w3, b3):
    """One-time weight prep (hoisted out of the forward path).

    Weights are (in_features, out_features); biases (out_features,) or (1, out_features).
    Returns MXU-ready bf16 weights and f32 biases, with layer 3 zero-padded to N=128.
    """
    b1f = jnp.asarray(b1, jnp.float32).reshape(1, HIDDEN)
    b2f = jnp.asarray(b2, jnp.float32).reshape(1, HIDDEN)
    w3p = jnp.zeros((HIDDEN, NUM_CLASSES_PADDED), jnp.float32).at[:, :NUM_CLASSES].set(w3)
    b3p = (jnp.zeros((1, NUM_CLASSES_PADDED), jnp.float32)
           .at[:, :NUM_CLASSES].set(jnp.asarray(b3, jnp.float32).reshape(1, NUM_CLASSES)))
    return (w1.astype(jnp.bfloat16), b1f,
            w2.astype(jnp.bfloat16), b2f,
            w3p.astype(jnp.bfloat16), b3p)


def three_layer_net(x, params, *, block_b=4096):
    """Fused forward pass of ThreeLayerNet.  x: (B, 150) -> (B, 25) float32.

    `params` must come from prepare_params().  Equivalent to PyTorch x @ W.T + b
    (with PyTorch W of shape (out, in) transposed into the (in, out) layout here).
    """
    w1b, b1f, w2b, b2f, w3b, b3f = params
    B = x.shape[0]

    # Batch tile: multiple of 8 (sublane).  Large default to amortize per-step overhead;
    # once the batch is big enough, cap TB so the grid has >= 4 tiles (v7x megacore).
    B8 = _round_up(max(B, 8), 8)
    TB = min(block_b, B8)
    if B8 >= 4 * 512:
        TB = min(TB, max(512, _round_up(pl.cdiv(B8, 4), 8)))
    B_pad = _round_up(B, TB)

    x_f32 = x.astype(jnp.float32)
    if B_pad != B:
        x_f32 = jnp.pad(x_f32, ((0, B_pad - B), (0, 0)))   # ragged last tile only

    grid = (B_pad // TB,)

    # Weights/biases: constant index_map -> VMEM-resident; Buffered(1) avoids reserving
    # a useless second copy of blocks that never change.
    def resident(shape):
        return pl.BlockSpec(shape, lambda i: (0, 0), pipeline_mode=pl.Buffered(1))

    flops = 2 * B_pad * (EXAMPLE_SIZE * HIDDEN + HIDDEN * HIDDEN + HIDDEN * NUM_CLASSES_PADDED)
    bytes_accessed = (
        B_pad * (EXAMPLE_SIZE * 4 + NUM_CLASSES * 4)                     # x (f32) + out (f32, 25-wide)
        + (EXAMPLE_SIZE * HIDDEN + HIDDEN * HIDDEN + HIDDEN * NUM_CLASSES_PADDED) * 2  # bf16 weights
        + (2 * HIDDEN + NUM_CLASSES_PADDED) * 4                          # f32 biases
    )

    out = pl.pallas_call(
        _mlp_kernel,
        out_shape=jax.ShapeDtypeStruct((B_pad, NUM_CLASSES), jnp.float32),
        grid=grid,
        in_specs=[
            pl.BlockSpec((TB, EXAMPLE_SIZE), lambda i: (i, 0)),          # streamed batch tiles (f32)
            resident((EXAMPLE_SIZE, HIDDEN)),
            resident((1, HIDDEN)),
            resident((HIDDEN, HIDDEN)),
            resident((1, HIDDEN)),
            resident((HIDDEN, NUM_CLASSES_PADDED)),
            resident((1, NUM_CLASSES_PADDED)),
        ],
        # Last dim 25 == full array dim (legal); masked vst but 5x fewer output bytes
        # than a 128-wide padded f32 output, and no wrapper-side slice pass.
        out_specs=pl.BlockSpec((TB, NUM_CLASSES), lambda i: (i, 0)),
        compiler_params=pltpu.CompilerParams(
            dimension_semantics=("parallel",),        # shard batch tiles across v7x's 2 TCs
            vmem_limit_bytes=_vmem_limit_bytes(TB),
        ),
        cost_estimate=pl.CostEstimate(
            flops=flops, transcendentals=0, bytes_accessed=bytes_accessed),
    )(x_f32, w1b, b1f, w2b, b2f, w3b, b3f)

    if B_pad != B:
        out = out[:B]
    return out


def init_params(key):
    """Deterministic init matching ThreeLayerNet.init_weights():
    weights ~ N(0, 1/sqrt(fan_in)), biases zero.  Weights stored as (in, out)."""
    k1, k2, k3 = jax.random.split(key, 3)
    w1 = jax.random.normal(k1, (EXAMPLE_SIZE, HIDDEN), jnp.float32) / np.sqrt(EXAMPLE_SIZE)
    b1 = jnp.zeros((1, HIDDEN), jnp.float32)
    w2 = jax.random.normal(k2, (HIDDEN, HIDDEN), jnp.float32) / np.sqrt(HIDDEN)
    b2 = jnp.zeros((1, HIDDEN), jnp.float32)
    w3 = jax.random.normal(k3, (HIDDEN, NUM_CLASSES), jnp.float32) / np.sqrt(HIDDEN)
    b3 = jnp.zeros((1, NUM_CLASSES), jnp.float32)
    return w1, b1, w2, b2, w3, b3


def _reference(x, w1, b1, w2, b2, w3, b3):
    """Pure-JAX reference mirroring the kernel's bf16-input / f32-accumulate arithmetic.

    Note: the original spec is f32 end-to-end; bf16 MXU inputs introduce ~1e-2 relative
    deviation vs an all-f32 reference, which is acceptable for this MLP forward.
    """
    bf = jnp.bfloat16
    h1 = jnp.maximum(
        jnp.dot(x.astype(bf), w1.astype(bf), preferred_element_type=jnp.float32) + b1, 0.0)
    h2 = jnp.maximum(
        jnp.dot(h1.astype(bf), w2.astype(bf), preferred_element_type=jnp.float32) + b2, 0.0)
    return jnp.dot(h2.astype(bf), w3.astype(bf), preferred_element_type=jnp.float32) + b3


if __name__ == "__main__":
    key = jax.random.PRNGKey(0)
    kx, kp = jax.random.split(key)

    batch = 8
    x = jax.random.normal(kx, (batch, EXAMPLE_SIZE), jnp.float32)
    raw_params = init_params(kp)
    params = prepare_params(*raw_params)   # one-time prep, reused across forward calls

    out = three_layer_net(x, params)
    out = jax.block_until_ready(out)

    ref = _reference(x, *raw_params)
    np.testing.assert_allclose(np.asarray(out), np.asarray(ref), rtol=1e-3, atol=1e-3)
    assert out.shape == (batch, NUM_CLASSES)

    print("KERNEL_OK")
</pallas_src>

<mosaic_0001>
module attributes {stable_mosaic.version = 11 : i64} {
  func.func @_mlp_kernel(%arg0: i32, %arg1: memref<8x150xf32, #tpu.memory_space<vmem>>, %arg2: memref<150x256xbf16, #tpu.memory_space<vmem>>, %arg3: memref<1x256xf32, #tpu.memory_space<vmem>>, %arg4: memref<256x256xbf16, #tpu.memory_space<vmem>>, %arg5: memref<1x256xf32, #tpu.memory_space<vmem>>, %arg6: memref<256x128xbf16, #tpu.memory_space<vmem>>, %arg7: memref<1x128xf32, #tpu.memory_space<vmem>>, %arg8: memref<8x25xf32, #tpu.memory_space<vmem>>) attributes {dimension_semantics = [#tpu.dimension_semantics<parallel>], iteration_bounds = array<i64: 1>, scalar_prefetch = 0 : i64, scratch_operands = 0 : i64, tpu.core_type = #tpu.core_type<tc>, window_params = [{transform_indices = @transform_0, window_bounds = array<i64: 8, 150>}, {pipeline_mode = #tpu.pipeline_mode<synchronous>, transform_indices = @transform_1, window_bounds = array<i64: 150, 256>}, {pipeline_mode = #tpu.pipeline_mode<synchronous>, transform_indices = @transform_2, window_bounds = array<i64: 1, 256>}, {pipeline_mode = #tpu.pipeline_mode<synchronous>, transform_indices = @transform_3, window_bounds = array<i64: 256, 256>}, {pipeline_mode = #tpu.pipeline_mode<synchronous>, transform_indices = @transform_4, window_bounds = array<i64: 1, 256>}, {pipeline_mode = #tpu.pipeline_mode<synchronous>, transform_indices = @transform_5, window_bounds = array<i64: 256, 128>}, {pipeline_mode = #tpu.pipeline_mode<synchronous>, transform_indices = @transform_6, window_bounds = array<i64: 1, 128>}, {transform_indices = @transform_7, window_bounds = array<i64: 8, 25>}]} {
    %c0 = arith.constant 0 : index
    %c0_0 = arith.constant 0 : index
    %0 = vector.load %arg1[%c0, %c0_0] : memref<8x150xf32, #tpu.memory_space<vmem>>, vector<8x150xf32>
    %1 = arith.truncf %0 : vector<8x150xf32> to vector<8x150xbf16>
    %c0_1 = arith.constant 0 : index
    %c0_2 = arith.constant 0 : index
    %2 = vector.load %arg2[%c0_1, %c0_2] : memref<150x256xbf16, #tpu.memory_space<vmem>>, vector<150x256xbf16>
    %cst = arith.constant dense<0.000000e+00> : vector<8x256xf32>
    %3 = tpu.matmul %1, %2, %cst {dimension_numbers = #tpu.dot_dimension_numbers<[1], [0], [0], [1], [0, 0, 1, 1], [], []>} : vector<8x150xbf16>, vector<150x256xbf16>, vector<8x256xf32> -> vector<8x256xf32>
    %c0_3 = arith.constant 0 : index
    %c0_4 = arith.constant 0 : index
    %4 = vector.load %arg3[%c0_3, %c0_4] : memref<1x256xf32, #tpu.memory_space<vmem>>, vector<1x256xf32>
    %5 = vector.broadcast %4 : vector<1x256xf32> to vector<8x256xf32>
    %6 = arith.addf %3, %5 : vector<8x256xf32>
    %cst_5 = arith.constant 0.000000e+00 : f32
    %7 = vector.broadcast %cst_5 : f32 to vector<8x256xf32>
    %8 = arith.maximumf %6, %7 : vector<8x256xf32>
    %9 = arith.truncf %8 : vector<8x256xf32> to vector<8x256xbf16>
    %c0_6 = arith.constant 0 : index
    %c0_7 = arith.constant 0 : index
    %10 = vector.load %arg4[%c0_6, %c0_7] : memref<256x256xbf16, #tpu.memory_space<vmem>>, vector<256x256xbf16>
    %cst_8 = arith.constant dense<0.000000e+00> : vector<8x256xf32>
    %11 = tpu.matmul %9, %10, %cst_8 {dimension_numbers = #tpu.dot_dimension_numbers<[1], [0], [0], [1], [0, 0, 1, 1], [], []>} : vector<8x256xbf16>, vector<256x256xbf16>, vector<8x256xf32> -> vector<8x256xf32>
    %c0_9 = arith.constant 0 : index
    %c0_10 = arith.constant 0 : index
    %12 = vector.load %arg5[%c0_9, %c0_10] : memref<1x256xf32, #tpu.memory_space<vmem>>, vector<1x256xf32>
    %13 = vector.broadcast %12 : vector<1x256xf32> to vector<8x256xf32>
    %14 = arith.addf %11, %13 : vector<8x256xf32>
    %cst_11 = arith.constant 0.000000e+00 : f32
    %15 = vector.broadcast %cst_11 : f32 to vector<8x256xf32>
    %16 = arith.maximumf %14, %15 : vector<8x256xf32>
    %17 = arith.truncf %16 : vector<8x256xf32> to vector<8x256xbf16>
    %c0_12 = arith.constant 0 : index
    %c0_13 = arith.constant 0 : index
    %18 = vector.load %arg6[%c0_12, %c0_13] : memref<256x128xbf16, #tpu.memory_space<vmem>>, vector<256x128xbf16>
    %cst_14 = arith.constant dense<0.000000e+00> : vector<8x128xf32>
    %19 = tpu.matmul %17, %18, %cst_14 {dimension_numbers = #tpu.dot_dimension_numbers<[1], [0], [0], [1], [0, 0, 1, 1], [], []>} : vector<8x256xbf16>, vector<256x128xbf16>, vector<8x128xf32> -> vector<8x128xf32>
    %c0_15 = arith.constant 0 : index
    %c0_16 = arith.constant 0 : index
    %20 = vector.load %arg7[%c0_15, %c0_16] : memref<1x128xf32, #tpu.memory_space<vmem>>, vector<1x128xf32>
    %21 = vector.broadcast %20 : vector<1x128xf32> to vector<8x128xf32>
    %22 = arith.addf %19, %21 : vector<8x128xf32>
    %23 = vector.extract_strided_slice %22 {offsets = [0, 0], sizes = [8, 25], strides = [1, 1]} : vector<8x128xf32> to vector<8x25xf32>
    %c0_17 = arith.constant 0 : index
    %c0_18 = arith.constant 0 : index
    %24 = vector.load %arg8[%c0_17, %c0_18] : memref<8x25xf32, #tpu.memory_space<vmem>>, vector<8x25xf32>
    tpu.vector_store %arg8[%c0_17, %c0_18], %23 {strides = array<i32>} : memref<8x25xf32, #tpu.memory_space<vmem>>, vector<8x25xf32>,
    return
  }
  func.func @transform_0(%arg0: i32) -> (i32, i32) {
    %c0_i32 = arith.constant 0 : i32
    %c0_i32_0 = arith.constant 0 : i32
    return %arg0, %c0_i32 : i32, i32
  }
  func.func @transform_1(%arg0: i32) -> (i32, i32) {
    %c0_i32 = arith.constant 0 : i32
    %c0_i32_0 = arith.constant 0 : i32
    %c0_i32_1 = arith.constant 0 : i32
    return %c0_i32, %c0_i32_0 : i32, i32
  }
  func.func @transform_2(%arg0: i32) -> (i32, i32) {
    %c0_i32 = arith.constant 0 : i32
    %c0_i32_0 = arith.constant 0 : i32
    %c0_i32_1 = arith.constant 0 : i32
    return %c0_i32, %c0_i32_0 : i32, i32
  }
  func.func @transform_3(%arg0: i32) -> (i32, i32) {
    %c0_i32 = arith.constant 0 : i32
    %c0_i32_0 = arith.constant 0 : i32
    %c0_i32_1 = arith.constant 0 : i32
    return %c0_i32, %c0_i32_0 : i32, i32
  }
  func.func @transform_4(%arg0: i32) -> (i32, i32) {
    %c0_i32 = arith.constant 0 : i32
    %c0_i32_0 = arith.constant 0 : i32
    %c0_i32_1 = arith.constant 0 : i32
    return %c0_i32, %c0_i32_0 : i32, i32
  }
  func.func @transform_5(%arg0: i32) -> (i32, i32) {
    %c0_i32 = arith.constant 0 : i32
    %c0_i32_0 = arith.constant 0 : i32
    %c0_i32_1 = arith.constant 0 : i32
    return %c0_i32, %c0_i32_0 : i32, i32
  }
  func.func @transform_6(%arg0: i32) -> (i32, i32) {
    %c0_i32 = arith.constant 0 : i32
    %c0_i32_0 = arith.constant 0 : i32
    %c0_i32_1 = arith.constant 0 : i32
    return %c0_i32, %c0_i32_0 : i32, i32
  }
  func.func @transform_7(%arg0: i32) -> (i32, i32) {
    %c0_i32 = arith.constant 0 : i32
    %c0_i32_0 = arith.constant 0 : i32
    return %arg0, %c0_i32 : i32, i32
  }
}

</mosaic_0001>

<bundles_post_ra>
// kernel: tpu_custom_call.1
= control target key start
LH: loop header
LB: loop body
LE: loop exit
PB: predicated region body
PF: predicated region fallthrough
CT: control target
= control target key end

     0   :  { %12 = vsyncpa [#allocation3], 0  ;;  %s1086_s0 = inlined_call_operand.hbm [shape: f32[8,150], index: 0, kind: input, shape index: {}]   ;;  %s1087_s1 = inlined_call_operand.hbm [shape: bf16[150,256], index: 1, kind: input, shape index: {}]   ;;  %s1088_s2 = inlined_call_operand.vmem [shape: f32[1,256], index: 2, kind: input, shape index: {}]   ;;  %s1089_s3 = inlined_call_operand.hbm [shape: bf16[256,256], index: 3, kind: input, shape index: {}]   ;;  %s1090_s4 = inlined_call_operand.vmem [shape: f32[1,256], index: 4, kind: input, shape index: {}]   ;;  %s1091_s5 = inlined_call_operand.hbm [shape: bf16[256,128], index: 5, kind: input, shape index: {}]   ;;  %s1092_s6 = inlined_call_operand.vmem [shape: f32[1,128], index: 6, kind: input, shape index: {}]   ;;  %s1093_s7 = inlined_call_operand.hbm [shape: f32[8,25], index: 7, kind: output, shape index: {}]  }
   0x1   :  { %13 = vsyncpa [#allocation6], 0 }
   0x2   :  { %14 = vsyncpa [#allocation9], 0 }
   0x3   :  { %15 = vsyncpa [#allocation4], 0  ;;  %s1013_s24 = smov [#allocation5]  }
   0x4   :  { %s31_s25 = sshll.u32 %s1013_s24, 4  ;;  %s32_s25 = int_to_ptr.vmem [resolvable:$true] %s31_s25 }
   0x5   :  { %s913_s26 = scalar_lea.vmem %s32_s25, 2432  ;;  %p918_p1 = scmp.lt.s32.totalorder %s32_s25, %s32_s25 }
   0x6   :  { %p914_p0 = scmp.ne.s32.totalorder %s32_s25, %s913_s26  ;;  %p919_p2 = scmp.lt.s32.totalorder %s913_s26, %s913_s26 }
   0x8   :  { %p920_p3 = por %p919_p2, %p918_p1 }
   0xa   :  { %p921_p4 = pnand %p920_p3, %p914_p0 }
   0xc   :  { %924 = shalt.err (!%p921_p4)
}
   0xd   :  { %s1014_s27 = smov 128   ;;  %s1015_s28 = smov 8  }
   0xe   :  { %37 = dma.hbm_to_vmem [thread:$0]  %s1087_s1, 2432, %s32_s25, [#allocation6], %s1014_s27, %s1014_s27, %s1015_s28  }
   0xf   :  { %s1016_s8 = smov [#allocation2]   ;;  %s1017_s10 = smov [#allocation7]  }
  0x10   :  { %s22_s9 = sshll.u32 %s1016_s8, 4  ;;  %s45_s11 = sshll.u32 %s1017_s10, 4  ;;  %s23_s9 = int_to_ptr.vmem [resolvable:$true] %s22_s9  ;;  %s46_s11 = int_to_ptr.vmem [resolvable:$true] %s45_s11 }
  0x11   :  { %s933_s12 = scalar_lea.vmem %s23_s9, 256  ;;  %p938_p6 = scmp.lt.s32.totalorder %s23_s9, %s23_s9 }
  0x12   :  { %p934_p5 = scmp.ne.s32.totalorder %s23_s9, %s933_s12  ;;  %p939_p7 = scmp.lt.s32.totalorder %s933_s12, %s933_s12 }
  0x14   :  { %p940_p8 = por %p939_p7, %p938_p6 }
  0x16   :  { %p941_p9 = pnand %p940_p8, %p934_p5 }
  0x18   :  { %944 = shalt.err (!%p941_p9)
}
  0x19   :  { %25 = dma.hbm_to_vmem [thread:$0]  %s1086_s0, 256, %s23_s9, [#allocation3]  }
  0x1a   :  { %s953_s15 = scalar_lea.vmem %s46_s11, 4096  ;;  %p958_p11 = scmp.lt.s32.totalorder %s46_s11, %s46_s11 }
  0x1b   :  { %p954_p10 = scmp.ne.s32.totalorder %s46_s11, %s953_s15  ;;  %p959_p12 = scmp.lt.s32.totalorder %s953_s15, %s953_s15 }
  0x1d   :  { %p960_p13 = por %p959_p12, %p958_p11 }
  0x1f   :  { %p961_p0 = pnand %p960_p13, %p954_p10 }
  0x21   :  { %964 = shalt.err (!%p961_p0)
}
  0x22   :  { %51 = dma.hbm_to_vmem [thread:$0]  %s1089_s3, 4096, %s46_s11, [#allocation6], %s1014_s27, %s1014_s27, %s1015_s28  }
  0x23   :  { %s1018_s17 = smov [#allocation8]  }
  0x24   :  { %s59_s18 = sshll.u32 %s1018_s17, 4  ;;  %s60_s18 = int_to_ptr.vmem [resolvable:$true] %s59_s18 }
  0x25   :  { %s973_s19 = scalar_lea.vmem %s60_s18, 2048  ;;  %p978_p2 = scmp.lt.s32.totalorder %s60_s18, %s60_s18 }
  0x26   :  { %p974_p1 = scmp.ne.s32.totalorder %s60_s18, %s973_s19  ;;  %p979_p3 = scmp.lt.s32.totalorder %s973_s19, %s973_s19 }
  0x28   :  { %p980_p4 = por %p979_p3, %p978_p2 }
  0x2a   :  { %p981_p5 = pnand %p980_p4, %p974_p1 }
  0x2c   :  { %984 = shalt.err (!%p981_p5)
}
  0x2d   :  { %s1019_s0 = smov 64   ;;  %s1020_s20 = smov 4  }
  0x2e   :  { %65 = dma.hbm_to_vmem [thread:$0]  %s1091_s5, 2048, %s60_s18, [#allocation9], %s1019_s0, %s1019_s0, %s1020_s20  }
  0x2f   :  { %1005 = dma.done.wait [#allocation3], 256  }
  0x30   :  { %1006 = vsyncadd [#allocation3], 4294967040 }
  0x31   :  { %1007 = dma.done.wait [#allocation6], 6528  }
  0x32   :  { %1008 = vsyncadd [#allocation6], 4294960768 }
  0x33   :  { %1009 = dma.done.wait [#allocation9], 2048  }
  0x34   :  { %1010 = vsyncadd [#allocation9], 4294965248  ;;  %v812_v0 = vld [vmem:[#allocation5 + $0x74] ss:$8 sps:$4 sm:$0xff]   ;;  %v814_v1 = vld [vmem:[#allocation5 + $0x70] ss:$8 sps:$4 sm:$0xff]  }
  0x35   :  { %222 = vmatprep.subr.bf16.mxu0 %v812_v0  ;;  %v815_v2 = vld [vmem:[#allocation5 + $0x64] ss:$8 sps:$4 sm:$0xff]   ;;  %v817_v3 = vld [vmem:[#allocation5 + $0x60] ss:$8 sps:$4 sm:$0xff]   ;;  %v818_v4 = vld [vmem:[#allocation5 + $0x54] ss:$8 sps:$4 sm:$0xff]  }
  0x36   :  { %223 = vmatpush1.bf16.msra.mxu0 %v814_v1  ;;  %v820_v5 = vld [vmem:[#allocation5 + $0x50] ss:$8 sps:$4 sm:$0xff]   ;;  %v821_v6 = vld [vmem:[#allocation5 + $0x44] ss:$8 sps:$4 sm:$0xff]   ;;  %v823_v7 = vld [vmem:[#allocation5 + $0x40] ss:$8 sps:$4 sm:$0xff]  }
  0x37   :  { %224 = vmatprep.subr.bf16.mxu0 %v815_v2  ;;  %v824_v8 = vld [vmem:[#allocation5 + $0x34] ss:$8 sps:$4 sm:$0xff]   ;;  %vm211_vm0 = vcmask 179200   ;;  %v843_v12 = vld [vmem:[#allocation7 + $0x70] ss:$8 sps:$4 sm:$0xff]   ;;  %vm215_vm1 = vcmask 1042432  }
  0x38   :  { %v82_v9 = vld [vmem:[#allocation2 + $0x8] sm:$0xff]  ;;  %v841_v11 = vld [vmem:[#allocation7 + $0x74] ss:$8 sps:$4 sm:$0xff]   ;;  %v829_v18 = vld [vmem:[#allocation5 + $0x20] ss:$8 sps:$4 sm:$0xff]   ;;  %vm691_vm2 = vcmask 203776  }
  0x39   :  { %v84_v10 = vpack.c.bf16 %v82_v9, %v82_v9  ;;  %v826_v13 = vld [vmem:[#allocation5 + $0x30] ss:$8 sps:$4 sm:$0xff]   ;;  %v844_v14 = vld [vmem:[#allocation7 + $0x64] ss:$8 sps:$4 sm:$0xff]   ;;  %471 = vmatprep.subr.bf16.mxu1 %v841_v11  ;;  %v847_v17 = vld [vmem:[#allocation7 + $0x54] ss:$8 sps:$4 sm:$0xff]  }
  0x3a   :  { %225 = vmatpush1.bf16.msra.mxu0 %v817_v3  ;;  %v827_v15 = vld [vmem:[#allocation5 + $0x24] ss:$8 sps:$4 sm:$0xff]   ;;  %472 = vmatpush1.bf16.msra.mxu1 %v843_v12  ;;  %v846_v16 = vld [vmem:[#allocation7 + $0x60] ss:$8 sps:$4 sm:$0xff]   ;;  %v830_v19 = vld [vmem:[#allocation5 + $0x14] ss:$8 sps:$4 sm:$0xff]  }
  0x3b   :  { %226 = vmatprep.subr.bf16.mxu0 %v818_v4  ;;  %731 = vmatprep.mubr.msk.bf16.mxu0 %vm211_vm0, %v84_v10  ;;  %v849_v20 = vld [vmem:[#allocation7 + $0x50] ss:$8 sps:$4 sm:$0xff]   ;;  %v850_v21 = vld [vmem:[#allocation7 + $0x44] ss:$8 sps:$4 sm:$0xff]   ;;  %v852_v25 = vld [vmem:[#allocation7 + $0x40] ss:$8 sps:$4 sm:$0xff]  }
  0x3c   :  { %473 = vmatprep.subr.bf16.mxu1 %v844_v14  ;;  %v832_v22 = vld [vmem:[#allocation5 + $0x10] ss:$8 sps:$4 sm:$0xff]   ;;  %v833_v23 = vld [vmem:[#allocation5 + $0x4] ss:$8 sps:$4 sm:$0xff]   ;;  %v835_v27 = vld [vmem:[#allocation5] ss:$8 sps:$4 sm:$0xff]  }
  0x3d   :  { %v103_v24 = vld [vmem:[#allocation5 + $0x90] sm:$0x77]  ;;  %v856_v31 = vld [vmem:[#allocation7 + $0x24] ss:$8 sps:$4 sm:$0xff]   ;;  %v858_v33 = vld [vmem:[#allocation7 + $0x20] ss:$8 sps:$4 sm:$0xff]  }
  0x3e   :  { %227 = vmatpush1.bf16.msra.mxu0 %v820_v5  ;;  %474 = vmatpush1.bf16.msra.mxu1 %v846_v16  ;;  %v853_v26 = vld [vmem:[#allocation7 + $0x34] ss:$8 sps:$4 sm:$0xff]   ;;  %v729_v28 = vcombine.high %v103_v24, %v103_v24  ;;  %v728_v29 = vcombine.low %v103_v24, %v103_v24  ;;  %v855_v30 = vld [vmem:[#allocation7 + $0x30] ss:$8 sps:$4 sm:$0xff]   ;;  %v862_v39 = vld [vmem:[#allocation7 + $0x4] ss:$8 sps:$4 sm:$0xff]  }
  0x3f   :  { %228 = vmatprep.subr.bf16.mxu0 %v821_v6  ;;  %475 = vmatprep.subr.bf16.mxu1 %v847_v17  ;;  %v838_v32 = vld [vmem:[#allocation5 + $0x84] ss:$8 sps:$4 sm:$0xff]   ;;  %v840_v36 = vld [vmem:[#allocation5 + $0x80] ss:$8 sps:$4 sm:$0xff]   ;;  %v81_v37 = vld [vmem:[#allocation2] sm:$0xff]  ;;  %v106_v6 = vlaneseq }
  0x40   :  { %v217_v34 = vsel %vm215_vm1, %v728_v29, 0  ;;  %v859_v35 = vld [vmem:[#allocation7 + $0x14] ss:$8 sps:$4 sm:$0xff]   ;;  %v861_v38 = vld [vmem:[#allocation7 + $0x10] ss:$8 sps:$4 sm:$0xff]   ;;  %v83_v40 = vpack.c.bf16 %v81_v37, %v81_v37  ;;  %v893_v62 = vld [vmem:[#allocation8 + $0x68] sm:$0xff]  }
  0x41   :  { %v864_v41 = vld [vmem:[#allocation7] ss:$8 sps:$4 sm:$0xff]   ;;  %v865_v42 = vld [vmem:[#allocation7 + $0xf4] ss:$8 sps:$4 sm:$0xff]   ;;  %v867_v43 = vld [vmem:[#allocation7 + $0xf0] ss:$8 sps:$4 sm:$0xff]  }
  0x42   :  { %229 = vmatpush1.bf16.msra.mxu0 %v823_v7  ;;  %476 = vmatpush1.bf16.msra.mxu1 %v849_v20  ;;  %v868_v44 = vld [vmem:[#allocation7 + $0xe4] ss:$8 sps:$4 sm:$0xff]   ;;  %v870_v45 = vld [vmem:[#allocation7 + $0xe0] ss:$8 sps:$4 sm:$0xff]   ;;  %v871_v46 = vld [vmem:[#allocation7 + $0xd4] ss:$8 sps:$4 sm:$0xff]  }
  0x43   :  { %230 = vmatprep.subr.bf16.mxu0 %v824_v8  ;;  %477 = vmatprep.subr.bf16.mxu1 %v850_v21  ;;  %v873_v47 = vld [vmem:[#allocation7 + $0xd0] ss:$8 sps:$4 sm:$0xff]   ;;  %v874_v48 = vld [vmem:[#allocation7 + $0xc4] ss:$8 sps:$4 sm:$0xff]   ;;  %v876_v49 = vld [vmem:[#allocation7 + $0xc0] ss:$8 sps:$4 sm:$0xff]  }
  0x44   :  { %v877_v50 = vld [vmem:[#allocation7 + $0xb4] ss:$8 sps:$4 sm:$0xff]   ;;  %v879_v51 = vld [vmem:[#allocation7 + $0xb0] ss:$8 sps:$4 sm:$0xff]   ;;  %v880_v52 = vld [vmem:[#allocation7 + $0xa4] ss:$8 sps:$4 sm:$0xff]  }
  0x45   :  { %v882_v53 = vld [vmem:[#allocation7 + $0xa0] ss:$8 sps:$4 sm:$0xff]   ;;  %v883_v54 = vld [vmem:[#allocation7 + $0x94] ss:$8 sps:$4 sm:$0xff]   ;;  %v885_v55 = vld [vmem:[#allocation7 + $0x90] ss:$8 sps:$4 sm:$0xff]  }
  0x46   :  { %231 = vmatpush1.bf16.msra.mxu0 %v826_v13  ;;  %478 = vmatpush1.bf16.msra.mxu1 %v852_v25  ;;  %v886_v56 = vld [vmem:[#allocation7 + $0x84] ss:$8 sps:$4 sm:$0xff]   ;;  %v888_v57 = vld [vmem:[#allocation7 + $0x80] ss:$8 sps:$4 sm:$0xff]   ;;  %v889_v58 = vld [vmem:[#allocation8 + $0x78] sm:$0xff]   ;;  %v107_v7 = vshrl.u32 %v106_v6, 7 }
  0x47   :  { %232 = vmatprep.subr.bf16.mxu0 %v827_v15  ;;  %479 = vmatprep.subr.bf16.mxu1 %v853_v26  ;;  %v890_v59 = vld [vmem:[#allocation8 + $0x38] sm:$0xff]   ;;  %v891_v60 = vld [vmem:[#allocation8 + $0x70] sm:$0xff]   ;;  %v894_v63 = vld [vmem:[#allocation8 + $0x28] sm:$0xff]  }
  0x48   :  { %v892_v61 = vld [vmem:[#allocation8 + $0x30] sm:$0xff]   ;;  %v895_v0 = vld [vmem:[#allocation8 + $0x60] sm:$0xff]   ;;  %v897_v2 = vld [vmem:[#allocation8 + $0x58] sm:$0xff]   ;;  %v108_v8 = vsub.s32 0, %v107_v7  ;;  %v112_v10 = vsub.s32 1, %v107_v7 }
  0x49   :  { %v896_v1 = vld [vmem:[#allocation8 + $0x20] sm:$0xff]   ;;  %v898_v3 = vld [vmem:[#allocation8 + $0x18] sm:$0xff]   ;;  %v899_v4 = vld [vmem:[#allocation8 + $0x50] sm:$0xff]  }
  0x4a   :  { %233 = vmatpush1.bf16.msra.mxu0 %v829_v18  ;;  %480 = vmatpush1.bf16.msra.mxu1 %v855_v30  ;;  %v900_v5 = vld [vmem:[#allocation8 + $0x10] sm:$0xff]   ;;  %v104_v9 = vld [vmem:[%s1088_s2] sm:$0x3]  ;;  %v902_v24 = vld [vmem:[#allocation8 + $0x8] sm:$0xff]  }
  0x4b   :  { %234 = vmatprep.subr.bf16.mxu0 %v830_v19  ;;  %481 = vmatprep.subr.bf16.mxu1 %v856_v31  ;;  %v109_v11 = vrot.slane %v104_v9, %v108_v8  ;;  %v113_v12 = vrot.slane %v104_v9, %v112_v10  ;;  %v903_v25 = vld [vmem:[#allocation8 + $0x40] sm:$0xff]  }
  0x4c   :  { %v904_v26 = vld [vmem:[#allocation8] sm:$0xff]  }
  0x4e   :  { %235 = vmatpush1.bf16.msra.mxu0 %v832_v22  ;;  %482 = vmatpush1.bf16.msra.mxu1 %v858_v33 }
  0x4f   :  { %236 = vmatprep.subr.bf16.mxu0 %v833_v23  ;;  %483 = vmatprep.subr.bf16.mxu1 %v859_v35  ;;  %v901_v23 = vld [vmem:[#allocation8 + $0x48] sm:$0xff]  }
  0x52   :  { %237 = vmatpush1.bf16.msra.mxu0 %v835_v27  ;;  %484 = vmatpush1.bf16.msra.mxu1 %v861_v38  ;;  %v299_v27 = vld [vmem:[%s1090_s4] sm:$0x3]  ;;  %s1021_s4 = smov [#allocation10]  }
  0x53   :  { %730 = vmatprep.subr.msk.bf16.mxu0 %vm215_vm1, %v729_v28  ;;  %485 = vmatprep.subr.bf16.mxu1 %v862_v39  ;;  %v304_v28 = vrot.slane %v299_v27, %v108_v8  ;;  %v308_v29 = vrot.slane %v299_v27, %v112_v10  ;;  %s699_s26 = sshll.u32 %s1021_s4, 4  ;;  %s700_s26 = int_to_ptr.vmem [resolvable:$true] %s699_s26 }
  0x54   :  { %s985_s27 = scalar_lea.vmem %s700_s26, 128  ;;  %p990_p7 = scmp.lt.s32.totalorder %s700_s26, %s700_s26 }
  0x55   :  { %p986_p6 = scmp.ne.s32.totalorder %s700_s26, %s985_s27  ;;  %p991_p8 = scmp.lt.s32.totalorder %s985_s27, %s985_s27 }
  0x56   :  { %251 = vmatpush2.bf16.msra.mxu0 %v217_v34  ;;  %486 = vmatpush1.bf16.msra.mxu1 %v864_v41  ;;  %v764_v41 = vld [vmem:[%s1092_s6] ss:$0 sm:$0xff] }
  0x57   :  { %252 = vmatprep.subr.bf16.mxu0 %v838_v32  ;;  %487 = vmatprep.subr.bf16.mxu1 %v865_v42  ;;  %p992_p9 = por %p991_p8, %p990_p7 }
  0x59   :  { %p993_p10 = pnand %p992_p9, %p986_p6 }
  0x5a   :  { %253 = vmatpush2.bf16.msra.mxu0 %v840_v36  ;;  %488 = vmatpush2.bf16.msra.mxu1 %v867_v43 }
  0x5b   :  { %489 = vmatprep.subr.bf16.mxu1 %v868_v44  ;;  %781 = vmatprep.subr.bf16.mxu0 %v889_v58 }
  0x5d   :  { %255 = vmatmul.mubr.bf16.vlgmr.msra.gmra.mxu0 %v83_v40 }
  0x5e   :  { %490 = vmatpush2.bf16.msra.mxu1 %v870_v45  ;;  %782 = vmatpush3.bf16.msra.mxu0 %v890_v59 }
  0x5f   :  { %491 = vmatprep.subr.bf16.mxu1 %v871_v46  ;;  %783 = vmatprep.subr.bf16.mxu0 %v891_v60 }
  0x62   :  { %492 = vmatpush2.bf16.msra.mxu1 %v873_v47  ;;  %784 = vmatpush3.bf16.msra.mxu0 %v892_v61 }
  0x63   :  { %493 = vmatprep.subr.bf16.mxu1 %v874_v48  ;;  %785 = vmatprep.subr.bf16.mxu0 %v893_v62 }
  0x66   :  { %494 = vmatpush2.bf16.msra.mxu1 %v876_v49  ;;  %786 = vmatpush3.bf16.msra.mxu0 %v894_v63 }
  0x67   :  { %495 = vmatprep.subr.bf16.mxu1 %v877_v50  ;;  %787 = vmatprep.subr.bf16.mxu0 %v895_v0 }
  0x6a   :  { %496 = vmatpush2.bf16.msra.mxu1 %v879_v51  ;;  %788 = vmatpush3.bf16.msra.mxu0 %v896_v1 }
  0x6b   :  { %497 = vmatprep.subr.bf16.mxu1 %v880_v52  ;;  %789 = vmatprep.subr.bf16.mxu0 %v897_v2 }
  0x6e   :  { %498 = vmatpush2.bf16.msra.mxu1 %v882_v53  ;;  %790 = vmatpush3.bf16.msra.mxu0 %v898_v3 }
  0x6f   :  { %499 = vmatprep.subr.bf16.mxu1 %v883_v54  ;;  %791 = vmatprep.subr.bf16.mxu0 %v899_v4 }
  0x72   :  { %500 = vmatpush2.bf16.msra.mxu1 %v885_v55  ;;  %792 = vmatpush3.bf16.msra.mxu0 %v900_v5 }
  0x73   :  { %501 = vmatprep.subr.bf16.mxu1 %v886_v56  ;;  %793 = vmatprep.subr.bf16.mxu0 %v901_v23 }
  0x76   :  { %502 = vmatpush2.bf16.msra.mxu1 %v888_v57  ;;  %794 = vmatpush3.bf16.msra.mxu0 %v902_v24 }
  0x77   :  { %795 = vmatprep.subr.bf16.mxu0 %v903_v25 }
  0x7a   :  { %796 = vmatpush3.bf16.msra.mxu0 %v904_v26 }
 0x11d   :  { %v256_v13 = vpop.f32.mrf.mxu0 }
 0x11e   :  { %v257_v14 = vadd.f32 %v256_v13, %v109_v11 }
 0x11f   :  { %v258_v15 = vpop.f32.mrf.mxu0 }
 0x120   :  { %v259_v16 = vadd.f32 %v258_v15, %v113_v12  ;;  %v263_v17 = vmax.f32 %v257_v14, 0.0 }
 0x121   :  { %v260_v18 = vpop.f32.mrf.mxu0 }
 0x122   :  { %v264_v19 = vmax.f32 %v259_v16, 0.0  ;;  %v265_v22 = vpack.c.bf16 %v263_v17, %v263_v17 }
 0x123   :  { %v261_v20 = vpop.f32.mrf.mxu0 }
 0x124   :  { %v266_v21 = vpack.c.bf16 %v264_v19, %v264_v19 }
 0x126   :  { %503 = vmatprep.mubr.bf16.mxu1 %v266_v21 }
 0x127   :  { %504 = vmatmul.mubr.bf16.vlgmr.msra.gmra.mxu1 %v265_v22 }
 0x1e7   :  { %v505_v30 = vpop.f32.mrf.mxu1 }
 0x1e8   :  { %v506_v31 = vadd.f32 %v505_v30, %v304_v28 }
 0x1e9   :  { %v507_v32 = vpop.f32.mrf.mxu1 }
 0x1ea   :  { %v508_v33 = vadd.f32 %v507_v32, %v308_v29  ;;  %v512_v34 = vmax.f32 %v506_v31, 0.0 }
 0x1eb   :  { %v509_v35 = vpop.f32.mrf.mxu1 }
 0x1ec   :  { %v513_v36 = vmax.f32 %v508_v33, 0.0  ;;  %v514_v39 = vpack.c.bf16 %v512_v34, %v512_v34 }
 0x1ed   :  { %v510_v37 = vpop.f32.mrf.mxu1 }
 0x1ee   :  { %v515_v38 = vpack.c.bf16 %v513_v36, %v513_v36 }
 0x1f0   :  { %683 = vmatprep.mubr.bf16.mxu0 %v515_v38 }
 0x1f1   :  { %684 = vmatmul.mubr.bf16.vlgmr.msra.gmra.mxu0 %v514_v39 }
 0x2b1   :  { %v797_v40 = vpop.f32.mrf.mxu0 }
 0x2b3   :  { %v798_v42 = vpop.f32.mrf.mxu0 }
 0x2b4   :  { %v799_v43 = vadd.f32 %v798_v42, %v797_v40 }
 0x2b5   :  { %v800_v44 = vpop.f32.mrf.mxu0 }
 0x2b6   :  { %v686_v45 = vadd.f32 %v799_v43, %v764_v41 }
 0x2b7   :  { %v801_v46 = vpop.f32.mrf.mxu0 }
 0x2b8   :  { %692 = vst.msk [vmem:[#allocation10] sm:$0xff] %vm691_vm2, %v686_v45 }
 0x2b9   :  { %996 = shalt.err (!%p993_p10)
}
 0x2ba   :  { %702 = dma.vmem_to_hbm [thread:$0]  %s700_s26, 128, %s1093_s7, [#allocation4]  }
 0x2bb   :  { %1011 = dma.done.wait [#allocation4], 128  }
 0x2bc   :  { %1012 = vsyncadd [#allocation4], 4294967168 }
 0x2bd   :  { %706 = vsyncpa [#allocation3], 1 }
 0x2be   :  { %707 = vsyncpa [#allocation6], 1 }
 0x2bf   :  { %708 = vsyncpa [#allocation9], 1 }
 0x2c0   :  { %709 = vsyncpa [#allocation4], 1 }

</bundles_post_ra>
